<compile_context>
chip_gen: v7x
topology: tpu7x:2x2x1
jax: 0.10.0
libtpu: 0.0.40
codegen_flags: <defaults>
</compile_context>

<pallas_src>
import functools

import numpy as np
import jax
import jax.numpy as jnp
from jax.experimental import pallas as pl
from jax.experimental.pallas import tpu as pltpu


# ----------------------------------------------------------------------------
# Kernel 1: 2x2 average pooling (texture2d_mip.forward / avg_pool_nhwc).
# Operates on the NHWC-flattened (H, W*C) view; row-pool and column-pool are a
# single (tr, 2tr) @ (2tr, W*C) @ (W*C, W/2*C) matmul chain per row tile.
# ----------------------------------------------------------------------------
def _pool_kernel(x_ref, ah_ref, aw_ref, o_ref):
    t = jnp.dot(ah_ref[...], x_ref[...], preferred_element_type=jnp.float32)
    o_ref[...] = jnp.dot(t, aw_ref[...], preferred_element_type=jnp.float32)


def _make_pool_mats(tr, w, c):
    ah = np.zeros((tr, 2 * tr), np.float32)
    r = np.arange(tr)
    ah[r, 2 * r] = 0.5
    ah[r, 2 * r + 1] = 0.5
    wo = w // 2
    awc = np.zeros((w * c, wo * c), np.float32)
    j2 = np.arange(wo)
    for ch in range(c):
        awc[(2 * j2) * c + ch, j2 * c + ch] = 0.5
        awc[(2 * j2 + 1) * c + ch, j2 * c + ch] = 0.5
    return jnp.asarray(ah), jnp.asarray(awc)


def avg_pool_2x2_nhwc(tex_nhwc):
    """texture2d_mip.forward: 2x2 average pool of an NHWC texture."""
    _, H, W, C = tex_nhwc.shape
    assert H % 2 == 0 and W % 2 == 0
    Ho, Wo = H // 2, W // 2
    # largest row tile that divides the output height (keeps blocks valid)
    tr = Ho
    for cand in (64, 32, 16, 8):
        if Ho % cand == 0:
            tr = cand
            break
    x2 = tex_nhwc[0].reshape(H, W * C)            # pure view, no transpose
    ah, awc = _make_pool_mats(tr, W, C)
    # TODO(synk): for very large W the (W*C, W*C/2) column-pool matrix should
    # become strided VPU adds; fine at the sizes exercised here.
    out2 = pl.pallas_call(
        _pool_kernel,
        out_shape=jax.ShapeDtypeStruct((Ho, Wo * C), jnp.float32),
        grid=(Ho // tr,),
        in_specs=[
            pl.BlockSpec((2 * tr, W * C), lambda i: (i, 0)),
            pl.BlockSpec((tr, 2 * tr), lambda i: (0, 0)),
            pl.BlockSpec((W * C, Wo * C), lambda i: (0, 0)),
        ],
        out_specs=pl.BlockSpec((tr, Wo * C), lambda i: (i, 0)),
        compiler_params=pltpu.CompilerParams(dimension_semantics=("parallel",)),
    )(x2, ah, awc)
    return out2.reshape(1, Ho, Wo, C)


# ----------------------------------------------------------------------------
# Kernel 2: bilinear texture sampling with 'wrap' boundary (nvdiffrast conv.:
# texel (i, j) centered at ((j + 0.5)/W, (i + 0.5)/H)).
#
# Separable form: Sx (W, TQ) holds the two x-taps, Sy (H, TQ) the two y-taps.
#   g   = tex (C*H, W) @ Sx                -> MXU, N = TQ = 512 wide
#   out = sum_h g[c*H+h, :] * Sy[h, :]     -> VPU multiply + sublane reduction
# ----------------------------------------------------------------------------
def _sample_kernel(uv_ref, tex_ref, o_ref, *, H, W, C):
    u = uv_ref[0:1, :]                                      # (1, TQ) f32
    v = uv_ref[1:2, :]
    tq = u.shape[1]

    x = u * W - 0.5
    y = v * H - 0.5
    x0f = jnp.floor(x)
    y0f = jnp.floor(y)
    fx = x - x0f
    fy = y - y0f
    x0 = x0f.astype(jnp.int32)
    y0 = y0f.astype(jnp.int32)
    if (W & (W - 1)) == 0:                                  # power-of-two wrap
        ix0 = jnp.bitwise_and(x0, W - 1)
        ix1 = jnp.bitwise_and(x0 + 1, W - 1)
    else:
        ix0 = jnp.mod(x0, W)
        ix1 = jnp.mod(x0 + 1, W)
    if (H & (H - 1)) == 0:
        iy0 = jnp.bitwise_and(y0, H - 1)
        iy1 = jnp.bitwise_and(y0 + 1, H - 1)
    else:
        iy0 = jnp.mod(y0, H)
        iy1 = jnp.mod(y0 + 1, H)

    jw = jax.lax.broadcasted_iota(jnp.int32, (W, tq), 0)
    sx = (jnp.where(jw == ix0, 1.0 - fx, 0.0)
          + jnp.where(jw == ix1, fx, 0.0))                  # (W, TQ)
    ih = jax.lax.broadcasted_iota(jnp.int32, (H, tq), 0)
    sy = (jnp.where(ih == iy0, 1.0 - fy, 0.0)
          + jnp.where(ih == iy1, fy, 0.0))                  # (H, TQ)

    # x-interpolated scanlines for every (channel, row): (C*H, TQ)
    g = jnp.dot(tex_ref[...], sx, preferred_element_type=jnp.float32)

    rows = []
    for c in range(C):                                      # static, small C
        gc = g[c * H:(c + 1) * H, :]                        # (H, TQ)
        rows.append(jnp.sum(gc * sy, axis=0, keepdims=True))
    o_ref[...] = jnp.concatenate(rows, axis=0)              # (C, TQ) lane-dense


def bilinear_sample(tex_chw_flat, hwc, uv, tq=512):
    """Sample an NHWC texture (pre-flattened to (C*H, W)) at uv, wrap+linear."""
    H, W, C = hwc
    B, Ho, Wo, _ = uv.shape
    N = B * Ho * Wo
    n_pad = ((N + tq - 1) // tq) * tq

    # pack u, v as two lane-dense rows of a single (2, N) slab
    uv_rows = jnp.transpose(uv.reshape(N, 2).astype(jnp.float32), (1, 0))
    if n_pad != N:
        uv_rows = jnp.pad(uv_rows, ((0, 0), (0, n_pad - N)))

    # TODO(synk): for textures too large for VMEM residency, chunk texture rows
    # over an "arbitrary" grid axis (or keep tex in pl.ANY + manual DMA).
    out = pl.pallas_call(
        functools.partial(_sample_kernel, H=H, W=W, C=C),
        out_shape=jax.ShapeDtypeStruct((C, n_pad), jnp.float32),
        grid=(n_pad // tq,),
        in_specs=[
            pl.BlockSpec((2, tq), lambda i: (0, i)),        # packed (u; v)
            pl.BlockSpec((C * H, W), lambda i: (0, 0)),     # resident texture
        ],
        out_specs=pl.BlockSpec((C, tq), lambda i: (0, i)),
        compiler_params=pltpu.CompilerParams(dimension_semantics=("parallel",)),
    )(uv_rows, tex_chw_flat)

    out = out[:, :N]                                        # drop pad
    return jnp.transpose(out, (1, 0)).reshape(B, Ho, Wo, C)


# ----------------------------------------------------------------------------
# Texture2D equivalent
# ----------------------------------------------------------------------------
class Texture2DPallas:
    def __init__(self, init, min_max=None):
        if isinstance(init, list):
            # TODO(synk): custom mip hierarchy sampling not implemented; use base.
            init = init[0]
        init = jnp.asarray(init, jnp.float32)
        assert init.ndim <= 4
        self.data = init.reshape((1,) * (4 - init.ndim) + init.shape)  # (1,H,W,C)
        self.min_max = min_max
        self.mips = None
        _, H, W, C = self.data.shape
        self._hwc = (H, W, C)
        # channel-major sampling layout, built once (not per forward)
        self._tex_chw = jnp.transpose(self.data[0], (2, 0, 1)).reshape(C * H, W)

    def build_mips(self):
        """Mip chain via the Pallas pooling kernel (not needed for uv_da=None)."""
        mips = [self.data]
        if self.data.shape[1] > 1 and self.data.shape[2] > 1:
            while mips[-1].shape[1] > 1 and mips[-1].shape[2] > 1:
                mips.append(avg_pool_2x2_nhwc(mips[-1]))
        self.mips = mips
        return mips

    def forward(self, uv, uv_da=None, f_mat=None, filter_mode='auto', **kwargs):
        # With uv_da=None, 'auto' resolves to 'linear': only mip 0 is sampled,
        # so the mip chain is skipped entirely (dead work otherwise).
        # TODO(synk): mip-filtered path (linear-mipmap-linear with uv_da) not implemented.
        assert uv_da is None
        return bilinear_sample(self._tex_chw, self._hwc, uv)


# ----------------------------------------------------------------------------
# Pure-JAX references for verification
# ----------------------------------------------------------------------------
def _ref_bilinear(data_nhwc, uv):
    _, H, W, C = data_nhwc.shape
    tex = data_nhwc[0]
    u = uv[..., 0] * W - 0.5
    v = uv[..., 1] * H - 0.5
    x0f = jnp.floor(u)
    y0f = jnp.floor(v)
    fx = u - x0f
    fy = v - y0f
    ix0 = jnp.mod(x0f.astype(jnp.int32), W)
    ix1 = jnp.mod(x0f.astype(jnp.int32) + 1, W)
    iy0 = jnp.mod(y0f.astype(jnp.int32), H)
    iy1 = jnp.mod(y0f.astype(jnp.int32) + 1, H)
    t00 = tex[iy0, ix0]
    t10 = tex[iy0, ix1]
    t01 = tex[iy1, ix0]
    t11 = tex[iy1, ix1]
    return (t00 * ((1 - fx) * (1 - fy))[..., None]
            + t10 * (fx * (1 - fy))[..., None]
            + t01 * ((1 - fx) * fy)[..., None]
            + t11 * (fx * fy)[..., None])


if __name__ == "__main__":
    key = jax.random.PRNGKey(0)
    k_tex, k_uv = jax.random.split(key)

    H, W, C = 16, 16, 4
    tex_init = jax.random.uniform(k_tex, (H, W, C), jnp.float32)   # 3D init -> (1,H,W,C)
    uv = jax.random.uniform(k_uv, (2, 16, 16, 2), jnp.float32)     # (B, Hout, Wout, 2)

    tex = Texture2DPallas(tex_init)
    out = jax.block_until_ready(tex.forward(uv))

    # check bilinear sampling against pure-JAX reference
    ref_out = _ref_bilinear(tex.data, uv)
    np.testing.assert_allclose(np.asarray(out), np.asarray(ref_out),
                               rtol=1e-5, atol=1e-5)

    # exercise + check the (lazy, off the hot path) mip pooling kernel
    mips = jax.block_until_ready(tex.build_mips())
    ref = np.asarray(tex.data)
    for m in mips[1:]:
        ref = ref.reshape(1, ref.shape[1] // 2, 2, ref.shape[2] // 2, 2, C).mean(axis=(2, 4))
        np.testing.assert_allclose(np.asarray(m), ref, rtol=1e-5, atol=1e-5)

    print("KERNEL_OK")
</pallas_src>

<mosaic_0001>
module attributes {stable_mosaic.version = 11 : i64} {
  func.func @_sample_kernel(%arg0: i32, %arg1: memref<2x512xf32, #tpu.memory_space<vmem>>, %arg2: memref<64x16xf32, #tpu.memory_space<vmem>>, %arg3: memref<4x512xf32, #tpu.memory_space<vmem>>) attributes {dimension_semantics = [#tpu.dimension_semantics<parallel>], iteration_bounds = array<i64: 1>, scalar_prefetch = 0 : i64, scratch_operands = 0 : i64, tpu.core_type = #tpu.core_type<tc>, window_params = [{transform_indices = @transform_0, window_bounds = array<i64: 2, 512>}, {pipeline_mode = #tpu.pipeline_mode<synchronous>, transform_indices = @transform_1, window_bounds = array<i64: 64, 16>}, {transform_indices = @transform_2, window_bounds = array<i64: 4, 512>}]} {
    %c0 = arith.constant 0 : index
    %c0_0 = arith.constant 0 : index
    %0 = vector.load %arg1[%c0, %c0_0] : memref<2x512xf32, #tpu.memory_space<vmem>>, vector<1x512xf32>
    %c1 = arith.constant 1 : index
    %c0_1 = arith.constant 0 : index
    %1 = vector.load %arg1[%c1, %c0_1] : memref<2x512xf32, #tpu.memory_space<vmem>>, vector<1x512xf32>
    %cst = arith.constant 1.600000e+01 : f32
    %2 = vector.broadcast %cst : f32 to vector<1x512xf32>
    %3 = arith.mulf %0, %2 : vector<1x512xf32>
    %cst_2 = arith.constant 5.000000e-01 : f32
    %4 = vector.broadcast %cst_2 : f32 to vector<1x512xf32>
    %5 = arith.subf %3, %4 : vector<1x512xf32>
    %cst_3 = arith.constant 1.600000e+01 : f32
    %6 = vector.broadcast %cst_3 : f32 to vector<1x512xf32>
    %7 = arith.mulf %1, %6 : vector<1x512xf32>
    %cst_4 = arith.constant 5.000000e-01 : f32
    %8 = vector.broadcast %cst_4 : f32 to vector<1x512xf32>
    %9 = arith.subf %7, %8 : vector<1x512xf32>
    %10 = math.floor %5 : vector<1x512xf32>
    %11 = math.floor %9 : vector<1x512xf32>
    %12 = arith.subf %5, %10 : vector<1x512xf32>
    %13 = arith.subf %9, %11 : vector<1x512xf32>
    %14 = arith.fptosi %10 : vector<1x512xf32> to vector<1x512xi32>
    %15 = arith.fptosi %11 : vector<1x512xf32> to vector<1x512xi32>
    %c15_i32 = arith.constant 15 : i32
    %16 = vector.broadcast %c15_i32 : i32 to vector<1x512xi32>
    %17 = arith.andi %14, %16 : vector<1x512xi32>
    %c1_i32 = arith.constant 1 : i32
    %18 = vector.broadcast %c1_i32 : i32 to vector<1x512xi32>
    %19 = arith.addi %14, %18 : vector<1x512xi32>
    %c15_i32_5 = arith.constant 15 : i32
    %20 = vector.broadcast %c15_i32_5 : i32 to vector<1x512xi32>
    %21 = arith.andi %19, %20 : vector<1x512xi32>
    %c15_i32_6 = arith.constant 15 : i32
    %22 = vector.broadcast %c15_i32_6 : i32 to vector<1x512xi32>
    %23 = arith.andi %15, %22 : vector<1x512xi32>
    %c1_i32_7 = arith.constant 1 : i32
    %24 = vector.broadcast %c1_i32_7 : i32 to vector<1x512xi32>
    %25 = arith.addi %15, %24 : vector<1x512xi32>
    %c15_i32_8 = arith.constant 15 : i32
    %26 = vector.broadcast %c15_i32_8 : i32 to vector<1x512xi32>
    %27 = arith.andi %25, %26 : vector<1x512xi32>
    %28 = tpu.iota {dimensions = array<i32: 0>} : vector<16x512xi32>
    %29 = vector.broadcast %17 : vector<1x512xi32> to vector<16x512xi32>
    %30 = arith.cmpi eq, %28, %29 : vector<16x512xi32>
    %cst_9 = arith.constant 1.000000e+00 : f32
    %31 = vector.broadcast %cst_9 : f32 to vector<1x512xf32>
    %32 = arith.subf %31, %12 : vector<1x512xf32>
    %cst_10 = arith.constant 0.000000e+00 : f32
    %33 = vector.shape_cast %32 : vector<1x512xf32> to vector<1x512xf32>
    %34 = vector.broadcast %33 : vector<1x512xf32> to vector<16x512xf32>
    %35 = vector.broadcast %cst_10 : f32 to vector<16x512xf32>
    %36 = arith.select %30, %34, %35 : vector<16x512xi1>, vector<16x512xf32>
    %37 = vector.broadcast %21 : vector<1x512xi32> to vector<16x512xi32>
    %38 = arith.cmpi eq, %28, %37 : vector<16x512xi32>
    %cst_11 = arith.constant 0.000000e+00 : f32
    %39 = vector.shape_cast %12 : vector<1x512xf32> to vector<1x512xf32>
    %40 = vector.broadcast %39 : vector<1x512xf32> to vector<16x512xf32>
    %41 = vector.broadcast %cst_11 : f32 to vector<16x512xf32>
    %42 = arith.select %38, %40, %41 : vector<16x512xi1>, vector<16x512xf32>
    %43 = arith.addf %36, %42 : vector<16x512xf32>
    %44 = tpu.iota {dimensions = array<i32: 0>} : vector<16x512xi32>
    %45 = vector.broadcast %23 : vector<1x512xi32> to vector<16x512xi32>
    %46 = arith.cmpi eq, %44, %45 : vector<16x512xi32>
    %cst_12 = arith.constant 1.000000e+00 : f32
    %47 = vector.broadcast %cst_12 : f32 to vector<1x512xf32>
    %48 = arith.subf %47, %13 : vector<1x512xf32>
    %cst_13 = arith.constant 0.000000e+00 : f32
    %49 = vector.shape_cast %48 : vector<1x512xf32> to vector<1x512xf32>
    %50 = vector.broadcast %49 : vector<1x512xf32> to vector<16x512xf32>
    %51 = vector.broadcast %cst_13 : f32 to vector<16x512xf32>
    %52 = arith.select %46, %50, %51 : vector<16x512xi1>, vector<16x512xf32>
    %53 = vector.broadcast %27 : vector<1x512xi32> to vector<16x512xi32>
    %54 = arith.cmpi eq, %44, %53 : vector<16x512xi32>
    %cst_14 = arith.constant 0.000000e+00 : f32
    %55 = vector.shape_cast %13 : vector<1x512xf32> to vector<1x512xf32>
    %56 = vector.broadcast %55 : vector<1x512xf32> to vector<16x512xf32>
    %57 = vector.broadcast %cst_14 : f32 to vector<16x512xf32>
    %58 = arith.select %54, %56, %57 : vector<16x512xi1>, vector<16x512xf32>
    %59 = arith.addf %52, %58 : vector<16x512xf32>
    %c0_15 = arith.constant 0 : index
    %c0_16 = arith.constant 0 : index
    %60 = vector.load %arg2[%c0_15, %c0_16] : memref<64x16xf32, #tpu.memory_space<vmem>>, vector<64x16xf32>
    %cst_17 = arith.constant dense<0.000000e+00> : vector<64x512xf32>
    %61 = tpu.matmul %60, %43, %cst_17 {dimension_numbers = #tpu.dot_dimension_numbers<[1], [0], [0], [1], [0, 0, 1, 1], [], []>} : vector<64x16xf32>, vector<16x512xf32>, vector<64x512xf32> -> vector<64x512xf32>
    %62 = vector.extract_strided_slice %61 {offsets = [0, 0], sizes = [16, 512], strides = [1, 1]} : vector<64x512xf32> to vector<16x512xf32>
    %63 = arith.mulf %62, %59 : vector<16x512xf32>
    %cst_18 = arith.constant dense<0.000000e+00> : vector<512xf32>
    %64 = vector.multi_reduction <add>, %63, %cst_18 [0] : vector<16x512xf32> to vector<512xf32>
    %65 = vector.shape_cast %64 : vector<512xf32> to vector<1x512xf32>
    %66 = vector.extract_strided_slice %61 {offsets = [16, 0], sizes = [16, 512], strides = [1, 1]} : vector<64x512xf32> to vector<16x512xf32>
    %67 = arith.mulf %66, %59 : vector<16x512xf32>
    %cst_19 = arith.constant dense<0.000000e+00> : vector<512xf32>
    %68 = vector.multi_reduction <add>, %67, %cst_19 [0] : vector<16x512xf32> to vector<512xf32>
    %69 = vector.shape_cast %68 : vector<512xf32> to vector<1x512xf32>
    %70 = vector.extract_strided_slice %61 {offsets = [32, 0], sizes = [16, 512], strides = [1, 1]} : vector<64x512xf32> to vector<16x512xf32>
    %71 = arith.mulf %70, %59 : vector<16x512xf32>
    %cst_20 = arith.constant dense<0.000000e+00> : vector<512xf32>
    %72 = vector.multi_reduction <add>, %71, %cst_20 [0] : vector<16x512xf32> to vector<512xf32>
    %73 = vector.shape_cast %72 : vector<512xf32> to vector<1x512xf32>
    %74 = vector.extract_strided_slice %61 {offsets = [48, 0], sizes = [16, 512], strides = [1, 1]} : vector<64x512xf32> to vector<16x512xf32>
    %75 = arith.mulf %74, %59 : vector<16x512xf32>
    %cst_21 = arith.constant dense<0.000000e+00> : vector<512xf32>
    %76 = vector.multi_reduction <add>, %75, %cst_21 [0] : vector<16x512xf32> to vector<512xf32>
    %77 = vector.shape_cast %76 : vector<512xf32> to vector<1x512xf32>
    %78 = tpu.concatenate %65, %69, %73, %77 in 0 : vector<1x512xf32>, vector<1x512xf32>, vector<1x512xf32>, vector<1x512xf32> -> vector<4x512xf32>
    %c0_22 = arith.constant 0 : index
    %c0_23 = arith.constant 0 : index
    %79 = vector.load %arg3[%c0_22, %c0_23] : memref<4x512xf32, #tpu.memory_space<vmem>>, vector<4x512xf32>
    tpu.vector_store %arg3[%c0_22, %c0_23], %78 {strides = array<i32>} : memref<4x512xf32, #tpu.memory_space<vmem>>, vector<4x512xf32>,
    return
  }
  func.func @transform_0(%arg0: i32) -> (i32, i32) {
    %c0_i32 = arith.constant 0 : i32
    %c0_i32_0 = arith.constant 0 : i32
    return %c0_i32, %arg0 : i32, i32
  }
  func.func @transform_1(%arg0: i32) -> (i32, i32) {
    %c0_i32 = arith.constant 0 : i32
    %c0_i32_0 = arith.constant 0 : i32
    %c0_i32_1 = arith.constant 0 : i32
    return %c0_i32, %c0_i32_0 : i32, i32
  }
  func.func @transform_2(%arg0: i32) -> (i32, i32) {
    %c0_i32 = arith.constant 0 : i32
    %c0_i32_0 = arith.constant 0 : i32
    return %c0_i32, %arg0 : i32, i32
  }
}

</mosaic_0001>

<bundles_post_ra>
// kernel: tpu_custom_call.1
= control target key start
LH: loop header
LB: loop body
LE: loop exit
PB: predicated region body
PF: predicated region fallthrough
CT: control target
= control target key end

     0   :  { %v31_v1 = vlaneseq  ;;  %v763_v3 = vmov 0.0   ;;  %s1007_s0 = inlined_call_operand.vmem [shape: f32[2,512], index: 0, kind: input, shape index: {}]   ;;  %s1008_s1 = inlined_call_operand.vmem [shape: f32[64,16], index: 1, kind: input, shape index: {}]   ;;  %s1009_s2 = inlined_call_operand.hbm [shape: f32[4,512], index: 2, kind: output, shape index: {}]  }
   0x1   :  { %v12_v0 = vld [vmem:[%s1007_s0] ss:$2 sm:$0xf]  ;;  %361 = vmatprep.mubr.f32.mxu0 %v763_v3  ;;  %474 = vmatprep.mubr.f32.mxu1 %v763_v3 }
   0x2   :  { %v15_v2 = vmul.f32 16.0, %v12_v0  ;;  %v785_v5 = vshrl.u32 %v31_v1, 7 }
   0x4   :  { %v707_v4 = vadd.f32 -0.5, %v15_v2 }
   0x5   :  { %7 = vsyncpa [#allocation3], 0  ;;  %v788_v9 = vsub.s32 1, %v785_v5  ;;  %v791_v10 = vsub.s32 3, %v785_v5  ;;  %v794_v13 = vsub.s32 0, %v785_v5  ;;  %v797_v14 = vsub.s32 2, %v785_v5 }
   0x6   :  { %v19_v6 = vfloor.f32 %v707_v4  ;;  %v800_v17 = vadd.s32 8, %v785_v5  ;;  %v264_v63 = vld [vmem:[%s1008_s1] sm:$0xff]  ;;  %v265_v0 = vld [vmem:[%s1008_s1 + $0x8] sm:$0xff]  ;;  %v266_v1 = vld [vmem:[%s1008_s1 + $0x10] sm:$0xff] }
   0x7   :  { %v267_v2 = vld [vmem:[%s1008_s1 + $0x18] sm:$0xff] }
   0x8   :  { %v21_v7 = vsub.f32 %v707_v4, %v19_v6  ;;  %v733_v8 = vtrunc.f32 %v19_v6  ;;  %v268_v4 = vld [vmem:[%s1008_s1 + $0x20] sm:$0xff]  ;;  %v269_v6 = vld [vmem:[%s1008_s1 + $0x28] sm:$0xff] }
   0xa   :  { %v734_v11 = vcvt.f32.s32 %v733_v8  ;;  %v58_v12 = vsub.f32 1.0, %v21_v7  ;;  %v120_v19 = vrot.slane %v21_v7, %v788_v9  ;;  %v128_v21 = vrot.slane %v21_v7, %v791_v10  ;;  %v271_v8 = vld [vmem:[%s1008_s1 + $0x38] sm:$0xff] }
   0xb   :  { %v116_v25 = vrot.slane %v21_v7, %v794_v13  ;;  %v124_v43 = vrot.slane %v21_v7, %v797_v14  ;;  %v270_v7 = vld [vmem:[%s1008_s1 + $0x30] sm:$0xff] }
   0xc   :  { %v25_v15 = vand.u32 15, %v734_v11  ;;  %v26_v16 = vadd.s32 1, %v734_v11  ;;  %v67_v18 = vrot.slane %v58_v12, %v788_v9  ;;  %v75_v20 = vrot.slane %v58_v12, %v791_v10  ;;  %v706_v11 = vld [vmem:[%s1007_s0 + $0x1] ss:$2 sm:$0xf]  ;;  %s764_s0 = smov [#allocation2]  }
   0xd   :  { %v63_v27 = vrot.slane %v58_v12, %v794_v13  ;;  %v71_v29 = vrot.slane %v58_v12, %v797_v14  ;;  %v17_v12 = vmul.f32 16.0, %v706_v11  ;;  %s698_s1 = sshll.u32 %s764_s0, 4  ;;  %s699_s1 = int_to_ptr.vmem [resolvable:$true] %s698_s1 }
   0xe   :  { %v27_v22 = vand.u32 15, %v26_v16  ;;  %v41_v23 = vrot.slane %v25_v15, %v788_v9  ;;  %v49_v24 = vrot.slane %v25_v15, %v791_v10  ;;  %v37_v26 = vrot.slane %v25_v15, %v794_v13  ;;  %s739_s29 = scalar_lea.vmem %s699_s1, 256  ;;  %p744_p1 = scmp.lt.s32.totalorder %s699_s1, %s699_s1 }
   0xf   :  { %v45_v28 = vrot.slane %v25_v15, %v797_v14  ;;  %v708_v15 = vadd.f32 -0.5, %v17_v12  ;;  %p740_p0 = scmp.ne.s32.totalorder %s699_s1, %s739_s29  ;;  %p745_p2 = scmp.lt.s32.totalorder %s739_s29, %s739_s29 }
  0x10   :  { %vm51_vm0 = vcmp.eq.s32.totalorder %v785_v5, %v41_v23  ;;  %vm55_vm1 = vcmp.eq.s32.totalorder %v800_v17, %v41_v23  ;;  %v95_v30 = vrot.slane %v27_v22, %v788_v9  ;;  %vm53_vm2 = vcmp.eq.s32.totalorder %v785_v5, %v49_v24 }
  0x11   :  { %v81_v31 = vsel %vm51_vm0, %v67_v18, 0.0  ;;  %v85_v32 = vsel %vm55_vm1, %v67_v18, 0.0  ;;  %vm57_vm3 = vcmp.eq.s32.totalorder %v800_v17, %v49_v24  ;;  %v83_v33 = vsel %vm53_vm2, %v75_v20, 0.0  ;;  %p746_p3 = por %p745_p2, %p744_p1 }
  0x12   :  { %vm105_vm4 = vcmp.eq.s32.totalorder %v785_v5, %v95_v30  ;;  %vm109_vm5 = vcmp.eq.s32.totalorder %v800_v17, %v95_v30  ;;  %v87_v34 = vsel %vm57_vm3, %v75_v20, 0.0  ;;  %v103_v35 = vrot.slane %v27_v22, %v791_v10 }
  0x13   :  { %v134_v36 = vsel %vm105_vm4, %v120_v19, 0.0  ;;  %v138_v37 = vsel %vm109_vm5, %v120_v19, 0.0  ;;  %vm50_vm6 = vcmp.eq.s32.totalorder %v785_v5, %v37_v26  ;;  %vm54_vm7 = vcmp.eq.s32.totalorder %v800_v17, %v37_v26  ;;  %p747_p4 = pnand %p746_p3, %p740_p0 }
  0x14   :  { %v142_v38 = vadd.f32 %v134_v36, %v81_v31  ;;  %v146_v39 = vadd.f32 %v138_v37, %v85_v32  ;;  %vm107_vm8 = vcmp.eq.s32.totalorder %v785_v5, %v103_v35  ;;  %vm111_vm9 = vcmp.eq.s32.totalorder %v800_v17, %v103_v35 }
  0x15   :  { %v136_v40 = vsel %vm107_vm8, %v128_v21, 0.0  ;;  %v140_v41 = vsel %vm111_vm9, %v128_v21, 0.0  ;;  %v80_v42 = vsel %vm50_vm6, %v63_v27, 0.0  ;;  %v91_v47 = vrot.slane %v27_v22, %v794_v13 }
  0x16   :  { %v725_v44 = vpack.c.bf16 %v146_v39, %v142_v38  ;;  %v144_v45 = vadd.f32 %v136_v40, %v83_v33  ;;  %v148_v46 = vadd.f32 %v140_v41, %v87_v34  ;;  %v84_v48 = vsel %vm54_vm7, %v63_v27, 0.0 }
  0x17   :  { %vm52_vm10 = vcmp.eq.s32.totalorder %v785_v5, %v45_v28  ;;  %vm56_vm11 = vcmp.eq.s32.totalorder %v800_v17, %v45_v28  ;;  %v99_v49 = vrot.slane %v27_v22, %v797_v14  ;;  %vm104_vm12 = vcmp.eq.s32.totalorder %v785_v5, %v91_v47 }
  0x18   :  { %726 = vmatprep.subr.bf16.mxu0 %v725_v44  ;;  %v729_v50 = vpack.c.bf16 %v148_v46, %v144_v45  ;;  %vm108_vm13 = vcmp.eq.s32.totalorder %v800_v17, %v91_v47  ;;  %v82_v51 = vsel %vm52_vm10, %v71_v29, 0.0  ;;  %v133_v52 = vsel %vm104_vm12, %v116_v25, 0.0 }
  0x19   :  { %v137_v53 = vsel %vm108_vm13, %v116_v25, 0.0  ;;  %v86_v54 = vsel %vm56_vm11, %v71_v29, 0.0  ;;  %vm106_vm14 = vcmp.eq.s32.totalorder %v785_v5, %v99_v49  ;;  %v141_v55 = vadd.f32 %v133_v52, %v80_v42 }
  0x1a   :  { %730 = vmatprep.subr.bf16.mxu1 %v729_v50  ;;  %v145_v56 = vadd.f32 %v137_v53, %v84_v48  ;;  %vm110_vm15 = vcmp.eq.s32.totalorder %v800_v17, %v99_v49  ;;  %v135_v57 = vsel %vm106_vm14, %v124_v43, 0.0  ;;  %vm272_vm0 = vcmask 130048  }
  0x1b   :  { %v139_v58 = vsel %vm110_vm15, %v124_v43, 0.0  ;;  %v143_v59 = vadd.f32 %v135_v57, %v82_v51  ;;  %v20_v16 = vfloor.f32 %v708_v15 }
  0x1c   :  { %v727_v60 = vpack.c.bf16 %v145_v56, %v141_v55  ;;  %v147_v61 = vadd.f32 %v139_v58, %v86_v54 }
  0x1d   :  { %v735_v18 = vtrunc.f32 %v20_v16  ;;  %v22_v21 = vsub.f32 %v708_v15, %v20_v16 }
  0x1e   :  { %728 = vmatpush1.bf16.msra.mxu0 %v727_v60  ;;  %v731_v62 = vpack.c.bf16 %v147_v61, %v143_v59 }
  0x1f   :  { %v736_v19 = vcvt.f32.s32 %v735_v18  ;;  %v173_v24 = vsub.f32 1.0, %v22_v21  ;;  %v231_v27 = vrot.slane %v22_v21, %v794_v13  ;;  %v239_v33 = vrot.slane %v22_v21, %v797_v14 }
  0x20   :  { %732 = vmatpush1.bf16.msra.mxu1 %v731_v62  ;;  %v243_v42 = vrot.slane %v22_v21, %v791_v10 }
  0x21   :  { %709 = vmatmul.mubr.msk.f32.vlgmr.msra.gmra.mrb[0].mxu0 %vm272_vm0, %v264_v63  ;;  %v29_v20 = vadd.s32 1, %v736_v19  ;;  %v28_v22 = vand.u32 15, %v736_v19  ;;  %v178_v26 = vrot.slane %v173_v24, %v794_v13  ;;  %v186_v32 = vrot.slane %v173_v24, %v797_v14 }
  0x22   :  { %367 = vmatprep.mubr.f32.mxu0 %v763_v3  ;;  %v182_v40 = vrot.slane %v173_v24, %v788_v9  ;;  %v190_v41 = vrot.slane %v173_v24, %v791_v10 }
  0x23   :  { %717 = vmatmul.mubr.msk.f32.vlgmr.msra.gmra.mrb[0].mxu1 %vm272_vm0, %v264_v63  ;;  %v30_v23 = vand.u32 15, %v29_v20  ;;  %v160_v28 = vrot.slane %v28_v22, %v797_v14  ;;  %v164_v36 = vrot.slane %v28_v22, %v791_v10 }
  0x24   :  { %480 = vmatprep.mubr.f32.mxu1 %v763_v3 }
  0x25   :  { %710 = vmatmul.mubr.msk.f32.gmra.mrb[2].mxu0 %vm272_vm0, %v265_v0  ;;  %v206_v25 = vrot.slane %v30_v23, %v794_v13  ;;  %v214_v29 = vrot.slane %v30_v23, %v797_v14  ;;  %vm167_vm3 = vcmp.eq.s32.totalorder %v785_v5, %v160_v28  ;;  %v210_v34 = vrot.slane %v30_v23, %v788_v9 }
  0x26   :  { %373 = vmatprep.mubr.f32.mxu0 %v763_v3  ;;  %v218_v37 = vrot.slane %v30_v23, %v791_v10  ;;  %v197_v38 = vsel %vm167_vm3, %v186_v32, 0.0  ;;  %v235_v14 = vrot.slane %v22_v21, %v788_v9  ;;  %vm168_vm11 = vcmp.eq.s32.totalorder %v785_v5, %v164_v36 }
  0x27   :  { %718 = vmatmul.mubr.msk.f32.gmra.mrb[2].mxu1 %vm272_vm0, %v265_v0  ;;  %vm219_vm2 = vcmp.eq.s32.totalorder %v785_v5, %v206_v25  ;;  %vm221_vm4 = vcmp.eq.s32.totalorder %v785_v5, %v214_v29  ;;  %vm220_vm6 = vcmp.eq.s32.totalorder %v785_v5, %v210_v34  ;;  %vm223_vm8 = vcmp.eq.s32.totalorder %v800_v17, %v206_v25 }
  0x28   :  { %486 = vmatprep.mubr.f32.mxu1 %v763_v3  ;;  %v248_v31 = vsel %vm219_vm2, %v231_v27, 0.0  ;;  %v250_v39 = vsel %vm221_vm4, %v239_v33, 0.0  ;;  %vm224_vm10 = vcmp.eq.s32.totalorder %v800_v17, %v210_v34  ;;  %vm222_vm12 = vcmp.eq.s32.totalorder %v785_v5, %v218_v37 }
  0x29   :  { %711 = vmatmul.mubr.msk.f32.gmra.mrb[4].mxu0 %vm272_vm0, %v266_v1  ;;  %vm171_vm13 = vcmp.eq.s32.totalorder %v800_v17, %v160_v28  ;;  %vm225_vm14 = vcmp.eq.s32.totalorder %v800_v17, %v214_v29  ;;  %v252_v43 = vsel %vm223_vm8, %v231_v27, 0.0  ;;  %vm172_vm15 = vcmp.eq.s32.totalorder %v800_v17, %v164_v36 }
  0x2a   :  { %379 = vmatprep.mubr.f32.mxu0 %v763_v3  ;;  %v249_v44 = vsel %vm220_vm6, %v235_v14, 0.0  ;;  %v253_v46 = vsel %vm224_vm10, %v235_v14, 0.0  ;;  %v198_v48 = vsel %vm168_vm11, %v190_v41, 0.0  ;;  %v251_v49 = vsel %vm222_vm12, %v243_v42, 0.0 }
  0x2b   :  { %719 = vmatmul.mubr.msk.f32.gmra.mrb[4].mxu1 %vm272_vm0, %v266_v1  ;;  %v201_v50 = vsel %vm171_vm13, %v186_v32, 0.0  ;;  %v254_v51 = vsel %vm225_vm14, %v239_v33, 0.0  ;;  %v202_v55 = vsel %vm172_vm15, %v190_v41, 0.0  ;;  %v940_v61 = vadd.f32 %v251_v49, %v198_v48 }
  0x2c   :  { %492 = vmatprep.mubr.f32.mxu1 %v763_v3  ;;  %v938_v60 = vadd.f32 %v254_v51, %v201_v50  ;;  %vm672_vm2 = vcmask 1041408   ;;  %vm677_vm3 = vcmask 1042432  }
  0x2d   :  { %712 = vmatmul.mubr.msk.f32.gmra.mrb[6].mxu0 %vm272_vm0, %v267_v2 }
  0x2e   :  { %385 = vmatprep.mubr.f32.mxu0 %v763_v3 }
  0x2f   :  { %720 = vmatmul.mubr.msk.f32.gmra.mrb[6].mxu1 %vm272_vm0, %v267_v2 }
  0x30   :  { %498 = vmatprep.mubr.f32.mxu1 %v763_v3 }
  0x31   :  { %713 = vmatmul.mubr.msk.f32.gmra.mrb[8].mxu0 %vm272_vm0, %v268_v4 }
  0x32   :  { %391 = vmatprep.mubr.f32.mxu0 %v763_v3 }
  0x33   :  { %721 = vmatmul.mubr.msk.f32.gmra.mrb[8].mxu1 %vm272_vm0, %v268_v4 }
  0x34   :  { %504 = vmatprep.mubr.f32.mxu1 %v763_v3 }
  0x35   :  { %714 = vmatmul.mubr.msk.f32.gmra.mrb[10].mxu0 %vm272_vm0, %v269_v6 }
  0x36   :  { %397 = vmatprep.mubr.f32.mxu0 %v763_v3 }
  0x37   :  { %722 = vmatmul.mubr.msk.f32.gmra.mrb[10].mxu1 %vm272_vm0, %v269_v6 }
  0x38   :  { %510 = vmatprep.mubr.f32.mxu1 %v763_v3 }
  0x39   :  { %715 = vmatmul.mubr.msk.f32.gmra.mrb[12].mxu0 %vm272_vm0, %v270_v7 }
  0x3a   :  { %403 = vmatprep.mubr.f32.mxu0 %v763_v3 }
  0x3b   :  { %723 = vmatmul.mubr.msk.f32.gmra.mrb[12].mxu1 %vm272_vm0, %v270_v7 }
  0x3c   :  { %516 = vmatprep.mubr.f32.mxu1 %v763_v3  ;;  %v152_v3 = vrot.slane %v28_v22, %v794_v13  ;;  %v156_v13 = vrot.slane %v28_v22, %v788_v9 }
  0x3d   :  { %716 = vmatmul.mubr.msk.f32.gmra.mrb[14].mxu0 %vm272_vm0, %v271_v8 }
  0x3e   :  { %vm165_vm1 = vcmp.eq.s32.totalorder %v785_v5, %v152_v3  ;;  %vm166_vm5 = vcmp.eq.s32.totalorder %v785_v5, %v156_v13  ;;  %vm169_vm7 = vcmp.eq.s32.totalorder %v800_v17, %v152_v3  ;;  %vm170_vm9 = vcmp.eq.s32.totalorder %v800_v17, %v156_v13 }
  0x3f   :  { %724 = vmatmul.mubr.msk.f32.gmra.mrb[14].mxu1 %vm272_vm0, %v271_v8  ;;  %v195_v30 = vsel %vm165_vm1, %v178_v26, 0.0  ;;  %v199_v9 = vsel %vm169_vm7, %v178_v26, 0.0  ;;  %vm226_vm0 = vcmp.eq.s32.totalorder %v800_v17, %v218_v37  ;;  %v196_v10 = vsel %vm166_vm5, %v182_v40, 0.0 }
  0x40   :  { %v905_v35 = vadd.f32 %v248_v31, %v195_v30  ;;  %v200_v45 = vsel %vm170_vm9, %v182_v40, 0.0  ;;  %v930_v54 = vadd.f32 %v252_v43, %v199_v9  ;;  %v255_v17 = vsel %vm226_vm0, %v243_v42, 0.0 }
  0x41   :  { %v932_v57 = vadd.f32 %v249_v44, %v196_v10  ;;  %v934_v58 = vadd.f32 %v253_v46, %v200_v45  ;;  %v936_v5 = vadd.f32 %v250_v39, %v197_v38  ;;  %v942_v63 = vadd.f32 %v255_v17, %v202_v55 }
  0x42   :  { %vm667_vm1 = vcmask 1040384  }
  0xf4   :  { %v363_v47 = vpop.f32.mrb[0].mxu0 }
  0xf5   :  { %v523_v52 = vmul.f32 %v363_v47, %v905_v35  ;;  %v365_v53 = vpop.f32.mrb[1].mxu0 }
  0xf6   :  { %v476_v56 = vpop.f32.mrb[0].mxu1  ;;  %v524_v2 = vmul.f32 %v365_v53, %v932_v57 }
  0xf7   :  { %v478_v59 = vpop.f32.mrb[1].mxu1  ;;  %v525_v7 = vmul.f32 %v476_v56, %v936_v5 }
  0xf8   :  { %v369_v62 = vpop.f32.mrb[2].mxu0  ;;  %v526_v15 = vmul.f32 %v478_v59, %v940_v61 }
  0xf9   :  { %v527_v0 = vmul.f32 %v369_v62, %v930_v54  ;;  %v371_v1 = vpop.f32.mrb[3].mxu0 }
  0xfa   :  { %v482_v4 = vpop.f32.mrb[2].mxu1  ;;  %v528_v6 = vmul.f32 %v371_v1, %v934_v58 }
  0xfb   :  { %v531_v8 = vadd.f32 %v527_v0, %v523_v52  ;;  %v529_v11 = vmul.f32 %v482_v4, %v938_v60  ;;  %v484_v12 = vpop.f32.mrb[3].mxu1 }
  0xfc   :  { %v538_v16 = vadd.f32 %v528_v6, %v524_v2  ;;  %v530_v18 = vmul.f32 %v484_v12, %v942_v63  ;;  %v375_v19 = vpop.f32.mrb[4].mxu0 }
  0xfd   :  { %v532_v20 = vrot.slane %v531_v8, 4  ;;  %v545_v21 = vadd.f32 %v529_v11, %v525_v7  ;;  %v559_v22 = vmul.f32 %v375_v19, %v905_v35  ;;  %v377_v23 = vpop.f32.mrb[5].mxu0 }
  0xfe   :  { %v539_v24 = vrot.slane %v538_v16, 4  ;;  %v552_v3 = vadd.f32 %v530_v18, %v526_v15  ;;  %v488_v25 = vpop.f32.mrb[4].mxu1  ;;  %v560_v31 = vmul.f32 %v377_v23, %v932_v57 }
  0xff   :  { %v533_v26 = vadd.f32 %v532_v20, %v531_v8  ;;  %v546_v27 = vrot.slane %v545_v21, 4  ;;  %v490_v28 = vpop.f32.mrb[5].mxu1  ;;  %v561_v34 = vmul.f32 %v488_v25, %v936_v5 }
 0x100   :  { %v540_v29 = vadd.f32 %v539_v24, %v538_v16  ;;  %v553_v30 = vrot.slane %v552_v3, 4  ;;  %v381_v32 = vpop.f32.mrb[6].mxu0  ;;  %v562_v40 = vmul.f32 %v490_v28, %v940_v61 }
 0x101   :  { %v534_v33 = vrot.slane %v533_v26, 2  ;;  %v547_v13 = vadd.f32 %v546_v27, %v545_v21  ;;  %v563_v36 = vmul.f32 %v381_v32, %v930_v54  ;;  %v383_v37 = vpop.f32.mrb[7].mxu0 }
 0x102   :  { %v541_v38 = vrot.slane %v540_v29, 2  ;;  %v554_v39 = vadd.f32 %v553_v30, %v552_v3  ;;  %v494_v14 = vpop.f32.mrb[6].mxu1  ;;  %v564_v41 = vmul.f32 %v383_v37, %v934_v58 }
 0x103   :  { %v535_v42 = vadd.f32 %v534_v33, %v533_v26  ;;  %v548_v9 = vrot.slane %v547_v13, 2  ;;  %v567_v43 = vadd.f32 %v563_v36, %v559_v22  ;;  %v565_v10 = vmul.f32 %v494_v14, %v938_v60  ;;  %v496_v44 = vpop.f32.mrb[7].mxu1 }
 0x104   :  { %v542_v45 = vadd.f32 %v541_v38, %v540_v29  ;;  %v555_v46 = vrot.slane %v554_v39, 2  ;;  %v574_v47 = vadd.f32 %v564_v41, %v560_v31  ;;  %v566_v48 = vmul.f32 %v496_v44, %v942_v63  ;;  %v387_v49 = vpop.f32.mrb[8].mxu0 }
 0x105   :  { %v536_v50 = vrot.slane %v535_v42, 1  ;;  %v549_v51 = vadd.f32 %v548_v9, %v547_v13  ;;  %v568_v52 = vrot.slane %v567_v43, 4  ;;  %v581_v53 = vadd.f32 %v565_v10, %v561_v34  ;;  %v389_v55 = vpop.f32.mrb[9].mxu0 }
 0x106   :  { %v543_v17 = vrot.slane %v542_v45, 1  ;;  %v556_v56 = vadd.f32 %v555_v46, %v554_v39  ;;  %v575_v59 = vrot.slane %v574_v47, 4  ;;  %v588_v62 = vadd.f32 %v566_v48, %v562_v40  ;;  %v500_v0 = vpop.f32.mrb[8].mxu1 }
 0x107   :  { %v959_v1 = vadd.f32 %v536_v50, %v535_v42  ;;  %v550_v2 = vrot.slane %v549_v51, 1  ;;  %v569_v4 = vadd.f32 %v568_v52, %v567_v43  ;;  %v582_v6 = vrot.slane %v581_v53, 4  ;;  %v502_v7 = vpop.f32.mrb[9].mxu1 }
 0x108   :  { %v961_v8 = vadd.f32 %v543_v17, %v542_v45  ;;  %v557_v11 = vrot.slane %v556_v56, 1  ;;  %v576_v12 = vadd.f32 %v575_v59, %v574_v47  ;;  %v589_v15 = vrot.slane %v588_v62, 4  ;;  %v393_v16 = vpop.f32.mrb[10].mxu0 }
 0x109   :  { %v963_v18 = vadd.f32 %v550_v2, %v549_v51  ;;  %v570_v19 = vrot.slane %v569_v4, 2  ;;  %v583_v20 = vadd.f32 %v582_v6, %v581_v53  ;;  %v595_v21 = vmul.f32 %v387_v49, %v905_v35  ;;  %v395_v22 = vpop.f32.mrb[11].mxu0 }
 0x10a   :  { %v966_v23 = vadd.f32 %v557_v11, %v556_v56  ;;  %v577_v24 = vrot.slane %v576_v12, 2  ;;  %v590_v3 = vadd.f32 %v589_v15, %v588_v62  ;;  %v597_v25 = vmul.f32 %v500_v0, %v936_v5  ;;  %v506_v26 = vpop.f32.mrb[10].mxu1 }
 0x10b   :  { %v571_v27 = vadd.f32 %v570_v19, %v569_v4  ;;  %v584_v28 = vrot.slane %v583_v20, 2  ;;  %v596_v29 = vmul.f32 %v389_v55, %v932_v57  ;;  %v598_v30 = vmul.f32 %v502_v7, %v940_v61  ;;  %v508_v31 = vpop.f32.mrb[11].mxu1 }
 0x10c   :  { %v578_v32 = vadd.f32 %v577_v24, %v576_v12  ;;  %v591_v33 = vrot.slane %v590_v3, 2  ;;  %v599_v13 = vmul.f32 %v393_v16, %v930_v54  ;;  %v601_v34 = vmul.f32 %v506_v26, %v938_v60  ;;  %v399_v36 = vpop.f32.mrb[12].mxu0 }
 0x10d   :  { %v572_v37 = vrot.slane %v571_v27, 1  ;;  %v585_v38 = vadd.f32 %v584_v28, %v583_v20  ;;  %v600_v39 = vmul.f32 %v395_v22, %v934_v58  ;;  %v602_v40 = vmul.f32 %v508_v31, %v942_v63  ;;  %v401_v14 = vpop.f32.mrb[13].mxu0 }
 0x10e   :  { %v579_v41 = vrot.slane %v578_v32, 1  ;;  %v592_v42 = vadd.f32 %v591_v33, %v590_v3  ;;  %v603_v9 = vadd.f32 %v599_v13, %v595_v21  ;;  %v617_v43 = vadd.f32 %v601_v34, %v597_v25  ;;  %v512_v10 = vpop.f32.mrb[12].mxu1 }
 0x10f   :  { %v573_v44 = vadd.f32 %v572_v37, %v571_v27  ;;  %v586_v45 = vrot.slane %v585_v38, 1  ;;  %v610_v46 = vadd.f32 %v600_v39, %v596_v29  ;;  %v624_v47 = vadd.f32 %v602_v40, %v598_v30  ;;  %v514_v48 = vpop.f32.mrb[13].mxu1 }
 0x110   :  { %v580_v49 = vadd.f32 %v579_v41, %v578_v32  ;;  %v593_v50 = vrot.slane %v592_v42, 1  ;;  %v604_v51 = vrot.slane %v603_v9, 4  ;;  %v618_v52 = vrot.slane %v617_v43, 4  ;;  %v405_v53 = vpop.f32.mrb[14].mxu0 }
 0x111   :  { %v587_v55 = vadd.f32 %v586_v45, %v585_v38  ;;  %v611_v17 = vrot.slane %v610_v46, 4  ;;  %v625_v56 = vrot.slane %v624_v47, 4  ;;  %v631_v59 = vmul.f32 %v399_v36, %v905_v35  ;;  %v407_v62 = vpop.f32.mrb[15].mxu0 }
 0x112   :  { %v594_v0 = vadd.f32 %v593_v50, %v592_v42  ;;  %v605_v2 = vadd.f32 %v604_v51, %v603_v9  ;;  %v619_v4 = vadd.f32 %v618_v52, %v617_v43  ;;  %v633_v6 = vmul.f32 %v512_v10, %v936_v5  ;;  %v518_v7 = vpop.f32.mrb[14].mxu1 }
 0x113   :  { %v612_v11 = vadd.f32 %v611_v17, %v610_v46  ;;  %v626_v12 = vadd.f32 %v625_v56, %v624_v47  ;;  %v632_v15 = vmul.f32 %v401_v14, %v932_v57  ;;  %v634_v16 = vmul.f32 %v514_v48, %v940_v61  ;;  %v520_v19 = vpop.f32.mrb[15].mxu1 }
 0x114   :  { %v606_v20 = vrot.slane %v605_v2, 2  ;;  %v620_v21 = vrot.slane %v619_v4, 2  ;;  %v635_v35 = vmul.f32 %v405_v53, %v930_v54  ;;  %v637_v22 = vmul.f32 %v518_v7, %v938_v60 }
 0x115   :  { %v613_v24 = vrot.slane %v612_v11, 2  ;;  %v627_v3 = vrot.slane %v626_v12, 2  ;;  %v636_v25 = vmul.f32 %v407_v62, %v934_v58  ;;  %v638_v5 = vmul.f32 %v520_v19, %v942_v63 }
 0x116   :  { %v607_v26 = vadd.f32 %v606_v20, %v605_v2  ;;  %v621_v27 = vadd.f32 %v620_v21, %v619_v4  ;;  %v639_v28 = vadd.f32 %v635_v35, %v631_v59  ;;  %v653_v57 = vadd.f32 %v637_v22, %v633_v6 }
 0x117   :  { %v614_v29 = vadd.f32 %v613_v24, %v612_v11  ;;  %v628_v61 = vadd.f32 %v627_v3, %v626_v12  ;;  %v646_v30 = vadd.f32 %v636_v25, %v632_v15  ;;  %v660_v31 = vadd.f32 %v638_v5, %v634_v16 }
 0x118   :  { %v608_v32 = vrot.slane %v607_v26, 1  ;;  %v622_v33 = vrot.slane %v621_v27, 1  ;;  %v640_v13 = vrot.slane %v639_v28, 4  ;;  %v654_v54 = vrot.slane %v653_v57, 4 }
 0x119   :  { %v615_v34 = vrot.slane %v614_v29, 1  ;;  %v629_v60 = vrot.slane %v628_v61, 1  ;;  %v647_v36 = vrot.slane %v646_v30, 4  ;;  %v661_v37 = vrot.slane %v660_v31, 4 }
 0x11a   :  { %v609_v38 = vadd.f32 %v608_v32, %v607_v26  ;;  %v623_v58 = vadd.f32 %v622_v33, %v621_v27  ;;  %v641_v39 = vadd.f32 %v640_v13, %v639_v28  ;;  %v655_v63 = vadd.f32 %v654_v54, %v653_v57 }
 0x11b   :  { %v616_v40 = vadd.f32 %v615_v34, %v614_v29  ;;  %v630_v14 = vadd.f32 %v629_v60, %v628_v61  ;;  %v648_v41 = vadd.f32 %v647_v36, %v646_v30  ;;  %v662_v42 = vadd.f32 %v661_v37, %v660_v31 }
 0x11c   :  { %v642_v9 = vrot.slane %v641_v39, 2  ;;  %v656_v43 = vrot.slane %v655_v63, 2  ;;  %v668_v10 = vsel %vm667_vm1, %v959_v1, %v573_v44  ;;  %v669_v45 = vsel %vm667_vm1, %v961_v8, %v580_v49 }
 0x11d   :  { %v649_v46 = vrot.slane %v648_v41, 2  ;;  %v663_v47 = vrot.slane %v662_v42, 2  ;;  %v670_v48 = vsel %vm667_vm1, %v963_v18, %v587_v55  ;;  %v671_v50 = vsel %vm667_vm1, %v966_v23, %v594_v0 }
 0x11e   :  { %v643_v51 = vadd.f32 %v642_v9, %v641_v39  ;;  %v657_v52 = vadd.f32 %v656_v43, %v655_v63  ;;  %v673_v53 = vsel %vm672_vm2, %v668_v10, %v609_v38  ;;  %v674_v17 = vsel %vm672_vm2, %v669_v45, %v616_v40 }
 0x11f   :  { %v650_v56 = vadd.f32 %v649_v46, %v648_v41  ;;  %v664_v59 = vadd.f32 %v663_v47, %v662_v42  ;;  %v675_v1 = vsel %vm672_vm2, %v670_v48, %v623_v58  ;;  %v676_v8 = vsel %vm672_vm2, %v671_v50, %v630_v14 }
 0x120   :  { %v644_v44 = vrot.slane %v643_v51, 1  ;;  %v658_v49 = vrot.slane %v657_v52, 1 }
 0x121   :  { %v651_v62 = vrot.slane %v650_v56, 1  ;;  %v665_v2 = vrot.slane %v664_v59, 1 }
 0x122   :  { %v645_v18 = vadd.f32 %v644_v44, %v643_v51  ;;  %v659_v55 = vadd.f32 %v658_v49, %v657_v52 }
 0x123   :  { %v652_v23 = vadd.f32 %v651_v62, %v650_v56  ;;  %v666_v0 = vadd.f32 %v665_v2, %v664_v59 }
 0x124   :  { %v678_v4 = vsel %vm677_vm3, %v673_v53, %v645_v18  ;;  %v680_v6 = vsel %vm677_vm3, %v675_v1, %v659_v55 }
 0x125   :  { %v679_v7 = vsel %vm677_vm3, %v674_v17, %v652_v23  ;;  %v681_v11 = vsel %vm677_vm3, %v676_v8, %v666_v0 }
 0x126   :  { %v686_v12 = vcombine.low %v678_v4, %v679_v7  ;;  %v687_v15 = vcombine.low %v680_v6, %v681_v11 }
 0x128   :  { %690 = vst [vmem:[#allocation2] sm:$0xff] %v686_v12  ;;  %691 = vst [vmem:[#allocation2 + $0x8] sm:$0xff] %v687_v15 }
 0x129   :  { %750 = shalt.err (!%p747_p4)
}
 0x12a   :  { %s751_s4 = scalar_lea.hbm %s1009_s2, 256 }
 0x12b   :  { %p752_p5 = scmp.ne.s32.totalorder %s1009_s2, %s751_s4  ;;  %p755_p6 = scmp.lt.u32.totalorder %s751_s4, %s1009_s2 }
 0x12d   :  { %p757_p7 = pnand %p755_p6, %p752_p5 }
 0x12f   :  { %760 = shalt.err (!%p757_p7)
}
 0x130   :  { %701 = dma.vmem_to_hbm [thread:$0]  %s699_s1, 256, %s1009_s2, [#allocation3]  }
 0x131   :  { %761 = dma.done.wait [#allocation3], 256  }
 0x132   :  { %762 = vsyncadd [#allocation3], 4294967040 }
 0x133   :  { %705 = vsyncpa [#allocation3], 1 }

</bundles_post_ra>
